<compile_context>
chip_gen: v7x
topology: tpu7x:2x2x1
jax: 0.10.0
libtpu: 0.0.40
codegen_flags: <defaults>
</compile_context>

<pallas_src>
import functools

import jax
import jax.numpy as jnp
import numpy as np
from jax import lax
from jax.experimental import pallas as pl
from jax.experimental.pallas import tpu as pltpu


def _normalize_scale_factor(scale_factor):
    """Mirror torch's `if self.scale_factor:` truthiness; broadcast to 4 coords."""
    if not scale_factor:
        return None
    if isinstance(scale_factor, (int, float)):
        return (float(scale_factor),) * 4
    vals = [float(v) for v in scale_factor]
    if len(vals) == 1:
        return (vals[0],) * 4
    assert len(vals) == 4, "scale_factor must be scalar or have 1 or 4 entries"
    return tuple(vals)


def _round_up(x, m):
    return -(-x // m) * m


def _padded_f32_bytes(rows, cols):
    """f32 VMEM footprint of a [rows, cols] buffer after (8, 128) tile padding."""
    return 4 * _round_up(rows, 8) * _round_up(cols, 128)


def _decoder_kernel(cls_ref, reg_ref, anc_ref, out_cls_ref, out_box_ref,
                    rmax_ref, rpay_ref, *, total_anchors, image_w, image_h,
                    scale_factor):
    """One grid step = one (batch b, anchor-tile t).

    cls_ref [1, TA, C], reg_ref/anc_ref [1, TA, 4]   (classes / coords on lanes)
    out_cls_ref [1, C, LANES] f32  : max_cls_heads transposed, lane-padded
    out_box_ref [1, 4, LANES] i32  : rows (x1, y1, x2, y2), lane-padded
    rmax_ref [1, C] f32            : running per-class max score
    rpay_ref [C+8, C] f32          : running gathered (cls row | reg | anchors)
    """
    _, ta, C = cls_ref.shape
    lanes = out_cls_ref.shape[-1]
    t = pl.program_id(1)
    num_t = pl.num_programs(1)

    cls = cls_ref[0]                      # [TA, C]
    reg = reg_ref[0]                      # [TA, 4]
    anc = anc_ref[0]                      # [TA, 4]

    # Ragged final tile: mask out-of-range anchors (compiled out when A % TA == 0).
    if total_anchors % ta != 0:
        gidx = t * ta + lax.broadcasted_iota(jnp.int32, (ta, 1), 0)
        valid = gidx < total_anchors
        cls = jnp.where(valid, cls, -1e30)     # finite sentinel: never wins the max
        reg = jnp.where(valid, reg, 0.0)       # keep the 0/1 gather matmul finite
        anc = jnp.where(valid, anc, 0.0)

    # Per-tile first-occurrence argmax over anchors, per class (classes on lanes).
    # TODO(synk): NaN class scores select no anchor here (gather returns zeros),
    # whereas torch.max would return the NaN position; only differs for NaN inputs.
    iota_a = lax.broadcasted_iota(jnp.int32, (ta, C), 0)
    tile_max = jnp.max(cls, axis=0, keepdims=True)                          # [1, C]
    tile_idx = jnp.min(jnp.where(cls == tile_max, iota_a, ta),
                       axis=0, keepdims=True)                               # [1, C]
    onehot = (iota_a == tile_idx).astype(jnp.float32)                       # [TA, C]

    # Exact 0/1 MXU gathers (contract over the anchor/sublane axis):
    #   g[f, c] = data[argmax_c, f]   (coords/features on sublanes, classes on lanes)
    dn = (((0,), (0,)), ((), ()))
    g_cls = lax.dot_general(cls, onehot, dn, preferred_element_type=jnp.float32)  # [C, C]
    g_reg = lax.dot_general(reg, onehot, dn, preferred_element_type=jnp.float32)  # [4, C]
    g_anc = lax.dot_general(anc, onehot, dn, preferred_element_type=jnp.float32)  # [4, C]

    @pl.when(t == 0)
    def _init():
        rmax_ref[...] = tile_max
        rpay_ref[0:C, :] = g_cls
        rpay_ref[C:C + 4, :] = g_reg
        rpay_ref[C + 4:C + 8, :] = g_anc

    @pl.when(t > 0)
    def _merge():
        # Strict '>' keeps the earlier tile on ties -> global first-occurrence argmax.
        upd = tile_max > rmax_ref[...]                                      # [1, C]
        rmax_ref[...] = jnp.where(upd, tile_max, rmax_ref[...])
        rpay_ref[0:C, :] = jnp.where(upd, g_cls, rpay_ref[0:C, :])
        rpay_ref[C:C + 4, :] = jnp.where(upd, g_reg, rpay_ref[C:C + 4, :])
        rpay_ref[C + 4:C + 8, :] = jnp.where(upd, g_anc, rpay_ref[C + 4:C + 8, :])

    @pl.when(t == num_t - 1)
    def _finalize():
        # Widen the class axis from C to LANES with a 0/1 selection matmul so every
        # store below is a full-lane (unmasked) vst; pad lanes carry zeros.
        sel = (lax.broadcasted_iota(jnp.int32, (C, lanes), 0) ==
               lax.broadcasted_iota(jnp.int32, (C, lanes), 1)).astype(jnp.float32)
        pay = lax.dot_general(rpay_ref[...], sel, (((1,), (0,)), ((), ())),
                              preferred_element_type=jnp.float32)           # [C+8, LANES]

        reg_xy = pay[C:C + 2, :]        # (tx, ty) rows, classes on lanes
        reg_wh = pay[C + 2:C + 4, :]    # (tw, th)
        anc_min = pay[C + 4:C + 6, :]   # (x1, y1)
        anc_max = pay[C + 6:C + 8, :]   # (x2, y2)

        rid2 = lax.broadcasted_iota(jnp.int32, (2, lanes), 0)   # 0 -> x row, 1 -> y row
        if scale_factor is not None:
            sx, sy, sw, sh = scale_factor
            reg_xy = reg_xy * (sx if sx == sy else jnp.where(rid2 == 0, sx, sy))
            reg_wh = reg_wh * (sw if sw == sh else jnp.where(rid2 == 0, sw, sh))

        # tx,ty,tw,th -> x1,y1,x2,y2 decode; identical op order to the reference.
        wh = anc_max - anc_min
        ctr = anc_min + 0.5 * wh
        pwh = jnp.exp(reg_wh) * wh
        pctr = reg_xy * wh + ctr
        pmin = pctr - 0.5 * pwh
        pmax = pctr + 0.5 * pwh

        # .int() truncation then clamp (torch order); bbox leaves the kernel as i32.
        pmin_i = jnp.maximum(pmin.astype(jnp.int32), 0)
        hi = (image_w - 1) if image_w == image_h else \
            jnp.where(rid2 == 0, image_w - 1, image_h - 1)
        pmax_i = jnp.minimum(pmax.astype(jnp.int32), hi)

        # Direct sub-slice stores (no in-kernel concatenation), all lane-dense.
        out_cls_ref[0] = pay[0:C, :]
        out_box_ref[0, 0:2, :] = pmin_i
        out_box_ref[0, 2:4, :] = pmax_i


def tiny_decoder(cls_heads, reg_heads, batch_anchors, *,
                 image_w, image_h, scale_factor, anchor_tile=2048):
    B, A, C = cls_heads.shape
    assert reg_heads.shape == (B, A, 4)
    assert batch_anchors.shape == (B, A, 4)
    sf = _normalize_scale_factor(scale_factor)

    # Anchor tile: whole axis if it fits, else the largest multiple of 8 <= anchor_tile.
    if A <= anchor_tile:
        ta = A                                  # full-dim block: no divisibility constraint
    else:
        ta = max(8, (anchor_tile // 8) * 8)
    num_t = pl.cdiv(A, ta)
    lanes = _round_up(max(C, 1), 128)           # lane-dense output slabs

    # Scoped-VMEM budget from (8,128)-padded tiles: portable across v5e (16 MiB
    # default) / v6e (32 MiB default) / v7x (64 MiB physical), with headroom.
    tile_bytes = _padded_f32_bytes(ta, C) + 2 * _padded_f32_bytes(ta, 4)
    slab_bytes = _padded_f32_bytes(C, lanes) + _padded_f32_bytes(4, lanes)
    vmem_limit = int(min(64 << 20, max(8 << 20, 4 * tile_bytes + 4 * slab_bytes)))

    kernel = functools.partial(
        _decoder_kernel, total_anchors=A, image_w=image_w, image_h=image_h,
        scale_factor=sf)

    flops = 2 * B * A * (C + 8) * C + 2 * B * (C + 8) * C * lanes
    bytes_accessed = 4 * (B * A * (C + 8) + B * (C + 4) * lanes)

    out_cls, out_box = pl.pallas_call(
        kernel,
        out_shape=(jax.ShapeDtypeStruct((B, C, lanes), jnp.float32),
                   jax.ShapeDtypeStruct((B, 4, lanes), jnp.int32)),
        grid_spec=pltpu.PrefetchScalarGridSpec(
            num_scalar_prefetch=0,
            grid=(B, num_t),
            in_specs=[pl.BlockSpec((1, ta, C), lambda b, t: (b, t, 0)),
                      pl.BlockSpec((1, ta, 4), lambda b, t: (b, t, 0)),
                      pl.BlockSpec((1, ta, 4), lambda b, t: (b, t, 0))],
            out_specs=(pl.BlockSpec((1, C, lanes), lambda b, t: (b, 0, 0)),
                       pl.BlockSpec((1, 4, lanes), lambda b, t: (b, 0, 0))),
            scratch_shapes=[pltpu.VMEM((1, C), jnp.float32),
                            pltpu.VMEM((C + 8, C), jnp.float32)],
        ),
        compiler_params=pltpu.CompilerParams(
            dimension_semantics=("parallel", "arbitrary"),
            vmem_limit_bytes=vmem_limit),
        cost_estimate=pl.CostEstimate(flops=flops,
                                      transcendentals=2 * B * lanes,
                                      bytes_accessed=bytes_accessed),
    )(cls_heads.astype(jnp.float32),
      reg_heads.astype(jnp.float32),
      batch_anchors.astype(jnp.float32))

    # Wrapper-side layout plumbing only (tiny arrays): drop lane padding, transpose.
    max_cls = jnp.swapaxes(out_cls[:, :, :C], 1, 2)        # [B, C, C]
    bbox = jnp.swapaxes(out_box[:, :, :C], 1, 2)           # [B, C, 4] i32
    image_pred_classes = jnp.zeros_like(max_cls)           # folded by XLA
    return max_cls, image_pred_classes, bbox


def tiny_decoder_ref(cls_heads, reg_heads, batch_anchors, *,
                     image_w, image_h, scale_factor):
    """Pure-JAX reference reproducing the torch forward."""
    B, A, C = cls_heads.shape
    idx = jnp.argmax(cls_heads, axis=1)                       # [B, C]
    bidx = jnp.arange(B)[:, None]
    max_cls = cls_heads[bidx, idx]                            # [B, C, C]
    reg_g = reg_heads[bidx, idx]                              # [B, C, 4]
    anch_g = batch_anchors[bidx, idx]                         # [B, C, 4]

    anchors_wh = anch_g[:, :, 2:] - anch_g[:, :, :2]
    anchors_ctr = anch_g[:, :, :2] + 0.5 * anchors_wh
    if scale_factor:
        reg_g = reg_g * jnp.asarray(scale_factor, jnp.float32)
    pred_wh = jnp.exp(reg_g[:, :, 2:]) * anchors_wh
    pred_ctr = reg_g[:, :, :2] * anchors_wh + anchors_ctr
    bbox = jnp.concatenate([pred_ctr - 0.5 * pred_wh,
                            pred_ctr + 0.5 * pred_wh], axis=2).astype(jnp.int32)
    bbox = bbox.at[:, :, 0].set(jnp.maximum(bbox[:, :, 0], 0))
    bbox = bbox.at[:, :, 1].set(jnp.maximum(bbox[:, :, 1], 0))
    bbox = bbox.at[:, :, 2].set(jnp.minimum(bbox[:, :, 2], image_w - 1))
    bbox = bbox.at[:, :, 3].set(jnp.minimum(bbox[:, :, 3], image_h - 1))
    return max_cls, jnp.zeros_like(max_cls), bbox


if __name__ == "__main__":
    def make_inputs(key, B, A, C, image_w, image_h):
        k1, k2, k3, k4 = jax.random.split(key, 4)
        cls_heads = jax.random.normal(k1, (B, A, C), dtype=jnp.float32)
        reg_heads = 0.5 * jax.random.normal(k2, (B, A, 4), dtype=jnp.float32)
        xy_min = jax.random.uniform(k3, (B, A, 2), dtype=jnp.float32,
                                    minval=0.0, maxval=image_w * 0.75)
        wh = jax.random.uniform(k4, (B, A, 2), dtype=jnp.float32,
                                minval=2.0, maxval=8.0)
        batch_anchors = jnp.concatenate([xy_min, xy_min + wh], axis=2)
        return cls_heads, reg_heads, batch_anchors

    key = jax.random.PRNGKey(0)
    configs = [
        # (B, A,  C, image_w, image_h, scale_factor,            anchor_tile)
        (2, 192, 8, 32, 32, [0.1, 0.1, 0.2, 0.2], 64),     # 3 full anchor tiles
        (2, 100, 8, 48, 32, [0.1, 0.15, 0.2, 0.25], 64),   # ragged last tile, w != h
    ]

    for (B, A, C, iw, ih, sf, ta) in configs:
        key, sub = jax.random.split(key)
        cls_heads, reg_heads, batch_anchors = make_inputs(sub, B, A, C, iw, ih)

        out = tiny_decoder(cls_heads, reg_heads, batch_anchors,
                           image_w=iw, image_h=ih, scale_factor=sf,
                           anchor_tile=ta)
        out = jax.block_until_ready(out)

        ref = tiny_decoder_ref(cls_heads, reg_heads, batch_anchors,
                               image_w=iw, image_h=ih, scale_factor=sf)

        np.testing.assert_allclose(np.asarray(out[0]), np.asarray(ref[0]),
                                   rtol=1e-6, atol=1e-6)
        np.testing.assert_array_equal(np.asarray(out[1]), np.asarray(ref[1]))
        # Exact bbox match: the 0/1 gather matmul is exact, the decode uses the
        # same f32 ops in the same order, and exp maps to the same hardware unit.
        np.testing.assert_array_equal(np.asarray(out[2]), np.asarray(ref[2]))

    print("KERNEL_OK")
</pallas_src>

<mosaic_0001>
module attributes {stable_mosaic.version = 11 : i64} {
  func.func @_decoder_kernel(%arg0: i32, %arg1: i32, %arg2: memref<1x64x8xf32, #tpu.memory_space<vmem>>, %arg3: memref<1x64x4xf32, #tpu.memory_space<vmem>>, %arg4: memref<1x64x4xf32, #tpu.memory_space<vmem>>, %arg5: memref<1x8x128xf32, #tpu.memory_space<vmem>>, %arg6: memref<1x4x128xi32, #tpu.memory_space<vmem>>, %arg7: memref<1x8xf32, #tpu.memory_space<vmem>>, %arg8: memref<16x8xf32, #tpu.memory_space<vmem>>) attributes {dimension_semantics = [#tpu.dimension_semantics<parallel>, #tpu.dimension_semantics<arbitrary>], iteration_bounds = array<i64: 2, 3>, scalar_prefetch = 0 : i64, scratch_operands = 2 : i64, tpu.core_type = #tpu.core_type<tc>, window_params = [{transform_indices = @transform_0, window_bounds = array<i64: 1, 64, 8>}, {transform_indices = @transform_1, window_bounds = array<i64: 1, 64, 4>}, {transform_indices = @transform_2, window_bounds = array<i64: 1, 64, 4>}, {transform_indices = @transform_3, window_bounds = array<i64: 1, 8, 128>}, {transform_indices = @transform_4, window_bounds = array<i64: 1, 4, 128>}]} {
    %c0 = arith.constant 0 : index
    %c0_0 = arith.constant 0 : index
    %c0_1 = arith.constant 0 : index
    %0 = vector.load %arg2[%c0, %c0_0, %c0_1] : memref<1x64x8xf32, #tpu.memory_space<vmem>>, vector<1x64x8xf32>
    %1 = vector.shape_cast %0 : vector<1x64x8xf32> to vector<64x8xf32>
    %c0_2 = arith.constant 0 : index
    %c0_3 = arith.constant 0 : index
    %c0_4 = arith.constant 0 : index
    %2 = vector.load %arg3[%c0_2, %c0_3, %c0_4] : memref<1x64x4xf32, #tpu.memory_space<vmem>>, vector<1x64x4xf32>
    %3 = vector.shape_cast %2 : vector<1x64x4xf32> to vector<64x4xf32>
    %c0_5 = arith.constant 0 : index
    %c0_6 = arith.constant 0 : index
    %c0_7 = arith.constant 0 : index
    %4 = vector.load %arg4[%c0_5, %c0_6, %c0_7] : memref<1x64x4xf32, #tpu.memory_space<vmem>>, vector<1x64x4xf32>
    %5 = vector.shape_cast %4 : vector<1x64x4xf32> to vector<64x4xf32>
    %6 = tpu.iota {dimensions = array<i32: 0>} : vector<64x8xi32>
    %cst = arith.constant dense<0xFF800000> : vector<8xf32>
    %7 = vector.multi_reduction <maximumf>, %1, %cst [0] : vector<64x8xf32> to vector<8xf32>
    %8 = vector.shape_cast %7 : vector<8xf32> to vector<1x8xf32>
    %9 = vector.broadcast %8 : vector<1x8xf32> to vector<64x8xf32>
    %10 = arith.cmpf oeq, %1, %9 : vector<64x8xf32>
    %c64_i32 = arith.constant 64 : i32
    %11 = vector.broadcast %c64_i32 : i32 to vector<64x8xi32>
    %12 = arith.select %10, %6, %11 : vector<64x8xi1>, vector<64x8xi32>
    %cst_8 = arith.constant dense<2147483647> : vector<8xi32>
    %13 = vector.multi_reduction <minsi>, %12, %cst_8 [0] : vector<64x8xi32> to vector<8xi32>
    %14 = vector.shape_cast %13 : vector<8xi32> to vector<1x8xi32>
    %15 = vector.broadcast %14 : vector<1x8xi32> to vector<64x8xi32>
    %16 = arith.cmpi eq, %6, %15 : vector<64x8xi32>
    %17 = arith.extui %16 : vector<64x8xi1> to vector<64x8xi32>
    %18 = arith.sitofp %17 : vector<64x8xi32> to vector<64x8xf32>
    %cst_9 = arith.constant dense<0.000000e+00> : vector<8x8xf32>
    %19 = tpu.matmul %1, %18, %cst_9 {dimension_numbers = #tpu.dot_dimension_numbers<[0], [0], [1], [1], [0, 1, 1, 1], [], []>} : vector<64x8xf32>, vector<64x8xf32>, vector<8x8xf32> -> vector<8x8xf32>
    %cst_10 = arith.constant dense<0.000000e+00> : vector<4x8xf32>
    %20 = tpu.matmul %3, %18, %cst_10 {dimension_numbers = #tpu.dot_dimension_numbers<[0], [0], [1], [1], [0, 1, 1, 1], [], []>} : vector<64x4xf32>, vector<64x8xf32>, vector<4x8xf32> -> vector<4x8xf32>
    %cst_11 = arith.constant dense<0.000000e+00> : vector<4x8xf32>
    %21 = tpu.matmul %5, %18, %cst_11 {dimension_numbers = #tpu.dot_dimension_numbers<[0], [0], [1], [1], [0, 1, 1, 1], [], []>} : vector<64x4xf32>, vector<64x8xf32>, vector<4x8xf32> -> vector<4x8xf32>
    %c0_i32 = arith.constant 0 : i32
    %22 = arith.cmpi eq, %arg1, %c0_i32 : i32
    %23 = arith.extui %22 : i1 to i32
    %c0_i32_12 = arith.constant 0 : i32
    %24 = arith.cmpi ne, %23, %c0_i32_12 : i32
    scf.if %24 {
      %c0_16 = arith.constant 0 : index
      %c0_17 = arith.constant 0 : index
      %31 = vector.load %arg7[%c0_16, %c0_17] : memref<1x8xf32, #tpu.memory_space<vmem>>, vector<1x8xf32>
      tpu.vector_store %arg7[%c0_16, %c0_17], %8 {strides = array<i32>} : memref<1x8xf32, #tpu.memory_space<vmem>>, vector<1x8xf32>,
      %c0_18 = arith.constant 0 : index
      %c0_19 = arith.constant 0 : index
      %32 = vector.load %arg8[%c0_18, %c0_19] : memref<16x8xf32, #tpu.memory_space<vmem>>, vector<8x8xf32>
      tpu.vector_store %arg8[%c0_18, %c0_19], %19 {strides = array<i32>} : memref<16x8xf32, #tpu.memory_space<vmem>>, vector<8x8xf32>,
      %c8 = arith.constant 8 : index
      %c0_20 = arith.constant 0 : index
      %33 = vector.load %arg8[%c8, %c0_20] : memref<16x8xf32, #tpu.memory_space<vmem>>, vector<4x8xf32>
      tpu.vector_store %arg8[%c8, %c0_20], %20 {strides = array<i32>} : memref<16x8xf32, #tpu.memory_space<vmem>>, vector<4x8xf32>,
      %c12 = arith.constant 12 : index
      %c0_21 = arith.constant 0 : index
      %34 = vector.load %arg8[%c12, %c0_21] : memref<16x8xf32, #tpu.memory_space<vmem>>, vector<4x8xf32>
      tpu.vector_store %arg8[%c12, %c0_21], %21 {strides = array<i32>} : memref<16x8xf32, #tpu.memory_space<vmem>>, vector<4x8xf32>,
    } else {
    }
    %c0_i32_13 = arith.constant 0 : i32
    %25 = arith.cmpi sgt, %arg1, %c0_i32_13 : i32
    %26 = arith.extui %25 : i1 to i32
    %c0_i32_14 = arith.constant 0 : i32
    %27 = arith.cmpi ne, %26, %c0_i32_14 : i32
    scf.if %27 {
      %c0_16 = arith.constant 0 : index
      %c0_17 = arith.constant 0 : index
      %31 = vector.load %arg7[%c0_16, %c0_17] : memref<1x8xf32, #tpu.memory_space<vmem>>, vector<1x8xf32>
      %32 = arith.cmpf ogt, %8, %31 : vector<1x8xf32>
      %c0_18 = arith.constant 0 : index
      %c0_19 = arith.constant 0 : index
      %33 = vector.load %arg7[%c0_18, %c0_19] : memref<1x8xf32, #tpu.memory_space<vmem>>, vector<1x8xf32>
      %34 = arith.select %32, %8, %33 : vector<1x8xi1>, vector<1x8xf32>
      %c0_20 = arith.constant 0 : index
      %c0_21 = arith.constant 0 : index
      %35 = vector.load %arg7[%c0_20, %c0_21] : memref<1x8xf32, #tpu.memory_space<vmem>>, vector<1x8xf32>
      tpu.vector_store %arg7[%c0_20, %c0_21], %34 {strides = array<i32>} : memref<1x8xf32, #tpu.memory_space<vmem>>, vector<1x8xf32>,
      %c0_22 = arith.constant 0 : index
      %c0_23 = arith.constant 0 : index
      %36 = vector.load %arg8[%c0_22, %c0_23] : memref<16x8xf32, #tpu.memory_space<vmem>>, vector<8x8xf32>
      %37 = vector.shape_cast %32 : vector<1x8xi1> to vector<1x8xi1>
      %38 = vector.broadcast %37 : vector<1x8xi1> to vector<8x8xi1>
      %39 = arith.select %38, %19, %36 : vector<8x8xi1>, vector<8x8xf32>
      %c0_24 = arith.constant 0 : index
      %c0_25 = arith.constant 0 : index
      %40 = vector.load %arg8[%c0_24, %c0_25] : memref<16x8xf32, #tpu.memory_space<vmem>>, vector<8x8xf32>
      tpu.vector_store %arg8[%c0_24, %c0_25], %39 {strides = array<i32>} : memref<16x8xf32, #tpu.memory_space<vmem>>, vector<8x8xf32>,
      %c8 = arith.constant 8 : index
      %c0_26 = arith.constant 0 : index
      %41 = vector.load %arg8[%c8, %c0_26] : memref<16x8xf32, #tpu.memory_space<vmem>>, vector<4x8xf32>
      %42 = vector.shape_cast %32 : vector<1x8xi1> to vector<1x8xi1>
      %43 = vector.broadcast %42 : vector<1x8xi1> to vector<4x8xi1>
      %44 = arith.select %43, %20, %41 : vector<4x8xi1>, vector<4x8xf32>
      %c8_27 = arith.constant 8 : index
      %c0_28 = arith.constant 0 : index
      %45 = vector.load %arg8[%c8_27, %c0_28] : memref<16x8xf32, #tpu.memory_space<vmem>>, vector<4x8xf32>
      tpu.vector_store %arg8[%c8_27, %c0_28], %44 {strides = array<i32>} : memref<16x8xf32, #tpu.memory_space<vmem>>, vector<4x8xf32>,
      %c12 = arith.constant 12 : index
      %c0_29 = arith.constant 0 : index
      %46 = vector.load %arg8[%c12, %c0_29] : memref<16x8xf32, #tpu.memory_space<vmem>>, vector<4x8xf32>
      %47 = vector.shape_cast %32 : vector<1x8xi1> to vector<1x8xi1>
      %48 = vector.broadcast %47 : vector<1x8xi1> to vector<4x8xi1>
      %49 = arith.select %48, %21, %46 : vector<4x8xi1>, vector<4x8xf32>
      %c12_30 = arith.constant 12 : index
      %c0_31 = arith.constant 0 : index
      %50 = vector.load %arg8[%c12_30, %c0_31] : memref<16x8xf32, #tpu.memory_space<vmem>>, vector<4x8xf32>
      tpu.vector_store %arg8[%c12_30, %c0_31], %49 {strides = array<i32>} : memref<16x8xf32, #tpu.memory_space<vmem>>, vector<4x8xf32>,
    } else {
    }
    %c2_i32 = arith.constant 2 : i32
    %28 = arith.cmpi eq, %arg1, %c2_i32 : i32
    %29 = arith.extui %28 : i1 to i32
    %c0_i32_15 = arith.constant 0 : i32
    %30 = arith.cmpi ne, %29, %c0_i32_15 : i32
    scf.if %30 {
      %31 = tpu.iota {dimensions = array<i32: 0>} : vector<8x128xi32>
      %32 = tpu.iota {dimensions = array<i32: 1>} : vector<8x128xi32>
      %33 = arith.cmpi eq, %31, %32 : vector<8x128xi32>
      %34 = arith.extui %33 : vector<8x128xi1> to vector<8x128xi32>
      %35 = arith.sitofp %34 : vector<8x128xi32> to vector<8x128xf32>
      %c0_16 = arith.constant 0 : index
      %c0_17 = arith.constant 0 : index
      %36 = vector.load %arg8[%c0_16, %c0_17] : memref<16x8xf32, #tpu.memory_space<vmem>>, vector<16x8xf32>
      %cst_18 = arith.constant dense<0.000000e+00> : vector<16x128xf32>
      %37 = tpu.matmul %36, %35, %cst_18 {dimension_numbers = #tpu.dot_dimension_numbers<[1], [0], [0], [1], [0, 0, 1, 1], [], []>} : vector<16x8xf32>, vector<8x128xf32>, vector<16x128xf32> -> vector<16x128xf32>
      %38 = vector.extract_strided_slice %37 {offsets = [8, 0], sizes = [2, 128], strides = [1, 1]} : vector<16x128xf32> to vector<2x128xf32>
      %39 = vector.extract_strided_slice %37 {offsets = [10, 0], sizes = [2, 128], strides = [1, 1]} : vector<16x128xf32> to vector<2x128xf32>
      %40 = vector.extract_strided_slice %37 {offsets = [12, 0], sizes = [2, 128], strides = [1, 1]} : vector<16x128xf32> to vector<2x128xf32>
      %41 = vector.extract_strided_slice %37 {offsets = [14, 0], sizes = [2, 128], strides = [1, 1]} : vector<16x128xf32> to vector<2x128xf32>
      %cst_19 = arith.constant 1.000000e-01 : f32
      %42 = vector.broadcast %cst_19 : f32 to vector<2x128xf32>
      %43 = arith.mulf %38, %42 : vector<2x128xf32>
      %cst_20 = arith.constant 2.000000e-01 : f32
      %44 = vector.broadcast %cst_20 : f32 to vector<2x128xf32>
      %45 = arith.mulf %39, %44 : vector<2x128xf32>
      %46 = arith.subf %41, %40 : vector<2x128xf32>
      %cst_21 = arith.constant 5.000000e-01 : f32
      %47 = vector.broadcast %cst_21 : f32 to vector<2x128xf32>
      %48 = arith.mulf %47, %46 : vector<2x128xf32>
      %49 = arith.addf %40, %48 : vector<2x128xf32>
      %50 = math.exp %45 : vector<2x128xf32>
      %51 = arith.mulf %50, %46 : vector<2x128xf32>
      %52 = arith.mulf %43, %46 : vector<2x128xf32>
      %53 = arith.addf %52, %49 : vector<2x128xf32>
      %cst_22 = arith.constant 5.000000e-01 : f32
      %54 = vector.broadcast %cst_22 : f32 to vector<2x128xf32>
      %55 = arith.mulf %54, %51 : vector<2x128xf32>
      %56 = arith.subf %53, %55 : vector<2x128xf32>
      %cst_23 = arith.constant 5.000000e-01 : f32
      %57 = vector.broadcast %cst_23 : f32 to vector<2x128xf32>
      %58 = arith.mulf %57, %51 : vector<2x128xf32>
      %59 = arith.addf %53, %58 : vector<2x128xf32>
      %60 = arith.fptosi %56 : vector<2x128xf32> to vector<2x128xi32>
      %c0_i32_24 = arith.constant 0 : i32
      %61 = vector.broadcast %c0_i32_24 : i32 to vector<2x128xi32>
      %62 = arith.maxsi %60, %61 : vector<2x128xi32>
      %63 = arith.fptosi %59 : vector<2x128xf32> to vector<2x128xi32>
      %c31_i32 = arith.constant 31 : i32
      %64 = vector.broadcast %c31_i32 : i32 to vector<2x128xi32>
      %65 = arith.minsi %63, %64 : vector<2x128xi32>
      %66 = vector.extract_strided_slice %37 {offsets = [0, 0], sizes = [8, 128], strides = [1, 1]} : vector<16x128xf32> to vector<8x128xf32>
      %c0_25 = arith.constant 0 : index
      %c0_26 = arith.constant 0 : index
      %c0_27 = arith.constant 0 : index
      %67 = vector.load %arg5[%c0_25, %c0_26, %c0_27] : memref<1x8x128xf32, #tpu.memory_space<vmem>>, vector<1x8x128xf32>
      %68 = vector.shape_cast %67 : vector<1x8x128xf32> to vector<8x128xf32>
      %69 = vector.shape_cast %66 : vector<8x128xf32> to vector<1x8x128xf32>
      tpu.vector_store %arg5[%c0_25, %c0_26, %c0_27], %69 {strides = array<i32>} : memref<1x8x128xf32, #tpu.memory_space<vmem>>, vector<1x8x128xf32>,
      %c0_28 = arith.constant 0 : index
      %c0_29 = arith.constant 0 : index
      %c0_30 = arith.constant 0 : index
      %70 = vector.load %arg6[%c0_28, %c0_29, %c0_30] : memref<1x4x128xi32, #tpu.memory_space<vmem>>, vector<1x2x128xi32>
      %71 = vector.shape_cast %70 : vector<1x2x128xi32> to vector<2x128xi32>
      %72 = vector.shape_cast %62 : vector<2x128xi32> to vector<1x2x128xi32>
      tpu.vector_store %arg6[%c0_28, %c0_29, %c0_30], %72 {strides = array<i32>} : memref<1x4x128xi32, #tpu.memory_space<vmem>>, vector<1x2x128xi32>,
      %c0_31 = arith.constant 0 : index
      %c2 = arith.constant 2 : index
      %c0_32 = arith.constant 0 : index
      %73 = vector.load %arg6[%c0_31, %c2, %c0_32] : memref<1x4x128xi32, #tpu.memory_space<vmem>>, vector<1x2x128xi32>
      %74 = vector.shape_cast %73 : vector<1x2x128xi32> to vector<2x128xi32>
      %75 = vector.shape_cast %65 : vector<2x128xi32> to vector<1x2x128xi32>
      tpu.vector_store %arg6[%c0_31, %c2, %c0_32], %75 {strides = array<i32>} : memref<1x4x128xi32, #tpu.memory_space<vmem>>, vector<1x2x128xi32>,
    } else {
    }
    return
  }
  func.func @transform_0(%arg0: i32, %arg1: i32) -> (i32, i32, i32) {
    %c0_i32 = arith.constant 0 : i32
    %c0_i32_0 = arith.constant 0 : i32
    return %arg0, %arg1, %c0_i32 : i32, i32, i32
  }
  func.func @transform_1(%arg0: i32, %arg1: i32) -> (i32, i32, i32) {
    %c0_i32 = arith.constant 0 : i32
    %c0_i32_0 = arith.constant 0 : i32
    return %arg0, %arg1, %c0_i32 : i32, i32, i32
  }
  func.func @transform_2(%arg0: i32, %arg1: i32) -> (i32, i32, i32) {
    %c0_i32 = arith.constant 0 : i32
    %c0_i32_0 = arith.constant 0 : i32
    return %arg0, %arg1, %c0_i32 : i32, i32, i32
  }
  func.func @transform_3(%arg0: i32, %arg1: i32) -> (i32, i32, i32) {
    %c0_i32 = arith.constant 0 : i32
    %c0_i32_0 = arith.constant 0 : i32
    %c0_i32_1 = arith.constant 0 : i32
    return %arg0, %c0_i32, %c0_i32_0 : i32, i32, i32
  }
  func.func @transform_4(%arg0: i32, %arg1: i32) -> (i32, i32, i32) {
    %c0_i32 = arith.constant 0 : i32
    %c0_i32_0 = arith.constant 0 : i32
    %c0_i32_1 = arith.constant 0 : i32
    return %arg0, %c0_i32, %c0_i32_0 : i32, i32, i32
  }
}

</mosaic_0001>

<bundles_post_ra>
// kernel: tpu_custom_call.1
= control target key start
LH: loop header
LB: loop body
LE: loop exit
PB: predicated region body
PF: predicated region fallthrough
CT: control target
= control target key end

     0   :  { %s1892_s0 = inlined_call_operand.vmem [shape: f32[2,192,8], index: 0, kind: input, shape index: {}]   ;;  %s1893_s1 = inlined_call_operand.vmem [shape: f32[2,192,4], index: 1, kind: input, shape index: {}]   ;;  %s1894_s2 = inlined_call_operand.vmem [shape: f32[2,192,4], index: 2, kind: input, shape index: {}]   ;;  %s1895_s3 = inlined_call_operand.hbm [shape: f32[2,8,128], index: 3, kind: output, shape index: {0}]   ;;  %s1896_s4 = inlined_call_operand.hbm [shape: s32[2,4,128], index: 4, kind: output, shape index: {1}]  }
   0x1   :  { %1897 = sst [smem:[#allocation10_spill]] %s1892_s0 }
   0x2   :  { %10 = vsyncpa [#allocation5], 0 }
   0x3   :  { %12 = vsyncpa [#allocation5 + $0x1], 0 }
   0x4   :  { %13 = vsyncpa [#allocation7], 0 }
   0x5   :  { %15 = vsyncpa [#allocation7 + $0x1], 0  ;;  %s1530_s15 = smov 0   ;;  %s1532_s16 = smov 0  }
   0x6   :  { %s1534_s17 = smov 0   ;;  %s1536_s18 = smov 0  }
   0x7   :  { %s1538_s19 = smov 0   ;;  %s1540_s20 = smov 0  }
   0x8   :  { %s1542_s21 = smov 0   ;;  %s1544_s22 = smov 0  }
   0x9 LB: > { %s1091_s23 = sadd.s32 4294967295, %s1495_s22   ;;  %s1092_s24 = sadd.s32 4294967294, %s1495_s22   ;;  %s1495_s22 = sphi %s1544_s22, %s21_s22   ;;  %s1491_s21 = sphi %s1542_s21, %s1915_s21   ;;  %s1487_s20 = sphi %s1540_s20, %s1914_s20   ;;  %s1483_s19 = sphi %s1538_s19, %s1913_s19   ;;  %s1479_s18 = sphi %s1536_s18, %s1912_s18   ;;  %s1475_s17 = sphi %s1534_s17, %s1911_s17   ;;  %s1471_s16 = sphi %s1532_s16, %s1910_s16   ;;  %s1467_s15 = sphi %s1530_s15, %s1909_s15  }
   0xa   : > { %s30_s25 = sadd.s32 1, %s1487_s20  ;;  %s33_s26 = sadd.s32 1, %s1491_s21 }
   0xb   : > { %p31_p0 = scmp.ge.s32.totalorder %s30_s25, 3  ;;  %p134_p1 = scmp.ne.s32.totalorder %s1475_s17, %s1471_s16 }
   0xc   : > { %p135_p2 = scmp.eq.s32.totalorder %s1091_s23, 5  ;;  %p140_p4 = scmp.ne.s32.totalorder %s1471_s16, %s1467_s15 }
   0xd   : > { %s1917_s25 = smov (%p31_p0, %s30_s25), 0  ;;  %s1919_s26 = smov (!%p31_p0, %s33_s26), %s1491_s21 }
   0xe   : > { %p1579_p3 = por %p135_p2, %p134_p1  ;;  %p35_p5 = scmp.ge.s32.totalorder %s1919_s26, 2 }
   0xf   : > { %p141_p6 = scmp.eq.s32.totalorder %s1092_s24, 5  ;;  %p1095_p7 = scmp.ge.s32.totalorder %s1495_s22, 1 }
  0x10   : > { %p224_p8 = scmp.lt.s32.totalorder %s1495_s22, 7  ;;  %s1921_s26 = smov (%p35_p5, %s1919_s26), 0 }
  0x11   : > { %p1589_p9 = por %p141_p6, %p140_p4  ;;  %s121_s29 = ssub.s32 %s1491_s21, %s1921_s26 }
  0x12   : > { %p225_p10 = pnand %p1095_p7, %p224_p8  ;;  %s124_s30 = sadd.s32 1, %s1475_s17 }
  0x13   : > { %p122_p11 = scmp.eq.s32.totalorder %s121_s29, 0  ;;  %s1098_s6 = sshll.u32 (!%p225_p10), %s1479_s18, 3  ;;  %v1497_v0 = vmov (!%p225_p10), 0.0|0.0   ;;  %vm1498_vm0 = vmmov (!%p225_p10), 0   ;;  %v1499_v1 = vmov (!%p225_p10), 0.0   ;;  %vm340_vm1 = vcmask (!%p225_p10), 64512  }
  0x14   : > { %228 = sbr.rel (%p225_p10) target bundleno = 717 (0x2cd), region = 32  ;;  %p278_p12 = scmp.lt.s32.totalorder (!%p225_p10), %s1483_s19, 1  ;;  %1244 = vmatprep.subr.bf16.mxu0 (!%p225_p10), %v1497_v0  ;;  %1256 = vmatprep.subr.bf16.mxu1 (!%p225_p10), %v1497_v0  ;;  %v331_v29 = vlaneseq (!%p225_p10) }
  0x15   : > { %s1597_s5 = scalar_select %p122_p11, %s1475_s17, %s124_s30  }
  0x16   : > { %p280_p13 = scmp.lt.s32.totalorder (!%p225_p10), %s1098_s6, 23  ;;  %s1602_s7 = sand.u32 (!%p225_p10), 1, %s1471_s16   ;;  %1198 = vmatprep.mubr.msk.f32.mxu0 (!%p225_p10), %vm1498_vm0, %v1499_v1  ;;  %1217 = vmatprep.mubr.msk.f32.mxu1 (!%p225_p10), %vm1498_vm0, %v1499_v1  ;;  %v1655_v33 = vshrl.u32 (!%p225_p10), %v331_v29, 7 }
  0x17   : > { %s1096_s10 = sshll.u32 (!%p225_p10), %s1602_s7, 3  ;;  %s1097_s11 = sshll.u32 (!%p225_p10), %s1602_s7, 2 }
  0x18   : > { %s1900_s0 = sld [smem:[#allocation10_spill]] (!%p225_p10)  ;;  %v1660_v37 = vadd.s32 (!%p225_p10), 16, %v1655_v33  ;;  %v1663_v38 = vadd.s32 (!%p225_p10), 24, %v1655_v33  ;;  %v1666_v39 = vadd.s32 (!%p225_p10), 48, %v1655_v33  ;;  %v1669_v40 = vadd.s32 (!%p225_p10), 56, %v1655_v33  ;;  %s1796_s14 = scalar_lea.vmem (!%p225_p10), [#allocation6], %s1097_s11 }
  0x19   : > { %v1675_v42 = vadd.s32 (!%p225_p10), 8, %v1655_v33  ;;  %v1678_v43 = vadd.s32 (!%p225_p10), 32, %v1655_v33  ;;  %v1681_v44 = vadd.s32 (!%p225_p10), 40, %v1655_v33  ;;  %p1139_p0 = scmp.ne.s32.totalorder (!%p225_p10), %s1479_s18, 0 }
  0x1b   : > { %s279_s8 = scalar_select %p278_p12, %s1483_s19, 1 }
  0x1c   : > { %s1923_s6 = smov (!%p280_p13, %s1098_s6), 23 }
  0x1d   : > { %s1280_s9 = smul.u32 24, %s279_s8 }
  0x1f   : > { %s283_s12 = sadd.s32 %s1280_s9, %s1923_s6 }
  0x20   : > { %s1613_s13 = sshll.u32 %s283_s12, 3 }
  0x21   : > { %s285_s24 = scalar_lea.vmem %s1900_s0, %s1613_s13  ;;  %s1627_s8 = scalar_lea.vmem %s1893_s1, %s1613_s13 }
  0x22   : > { %v1619_v2 = vld [vmem:[%s285_s24] sm:$0xff]  ;;  %v1621_v3 = vld [vmem:[%s285_s24 + $0x8] sm:$0xff]  ;;  %v309_v4 = vld [vmem:[%s285_s24 + $0x10] sm:$0xff]  ;;  %s1711_s12 = scalar_lea.vmem %s1894_s2, %s1613_s13  ;;  %s1792_s13 = scalar_lea.vmem [#allocation4], %s1096_s10 }
  0x23   : > { %433 = vxpose.xlu0.b32.start [1/8] (short) (narrow) %v1619_v2, 8  ;;  %v341_v5 = vsel %vm340_vm1, %v1619_v2, -inf  ;;  %v342_v6 = vsel %vm340_vm1, %v1621_v3, -inf  ;;  %v343_v7 = vsel %vm340_vm1, %v309_v4, -inf  ;;  %v310_v8 = vld [vmem:[%s285_s24 + $0x18] sm:$0xff]  ;;  %v1635_v9 = vld [vmem:[%s285_s24 + $0x20] sm:$0xff] }
  0x24   : > { %v344_v10 = vsel %vm340_vm1, %v310_v8, -inf  ;;  %v345_v11 = vsel %vm340_vm1, %v1635_v9, -inf  ;;  %v1640_v12 = vld [vmem:[%s285_s24 + $0x28] sm:$0xff]  ;;  %v313_v13 = vld [vmem:[%s285_s24 + $0x30] sm:$0xff]  ;;  %v1642_v14 = vld [vmem:[%s285_s24 + $0x38] sm:$0xff] }
  0x25   : > { %v346_v15 = vmax.f32 %v341_v5, %v345_v11  ;;  %v347_v16 = vsel %vm340_vm1, %v1640_v12, -inf  ;;  %v349_v17 = vsel %vm340_vm1, %v313_v13, -inf  ;;  %v351_v18 = vsel %vm340_vm1, %v1642_v14, -inf  ;;  %v315_v19 = vld [vmem:[%s1627_s8] sm:$0xff]  ;;  %v316_v23 = vld [vmem:[%s1627_s8 + $0x8] sm:$0xff]  ;;  %v317_v27 = vld [vmem:[%s1627_s8 + $0x10] sm:$0xff] }
  0x26   : > { %v348_v20 = vmax.f32 %v342_v6, %v347_v16  ;;  %v350_v21 = vmax.f32 %v343_v7, %v349_v17  ;;  %v352_v22 = vmax.f32 %v344_v10, %v351_v18  ;;  %539 = vxpose.xlu1.b32.start [1/8] (short) (narrow) %v315_v19, 8  ;;  %v318_v31 = vld [vmem:[%s1627_s8 + $0x18] sm:$0xff]  ;;  %v319_v35 = vld [vmem:[%s1627_s8 + $0x20] sm:$0xff]  ;;  %v320_v45 = vld [vmem:[%s1627_s8 + $0x28] sm:$0xff] }
  0x27   : > { %434 = vxpose.xlu0.b32.cont [2/8] (short) (narrow) %v1621_v3, 8  ;;  %v321_v55 = vld [vmem:[%s1627_s8 + $0x30] sm:$0xff]  ;;  %v327_v18 = vld [vmem:[%s1711_s12 + $0x20] sm:$0xff] }
  0x28   : > { %v353_v24 = vmax.f32 %v346_v15, %v348_v20  ;;  %v354_v25 = vmax.f32 %v350_v21, %v352_v22  ;;  %v326_v15 = vld [vmem:[%s1711_s12 + $0x18] sm:$0xff]  ;;  %v328_v21 = vld [vmem:[%s1711_s12 + $0x28] sm:$0xff]  ;;  %v1500_v22 = vmov 1.0|1.0  }
  0x2a   : > { %v355_v26 = vmax.f32 %v353_v24, %v354_v25  ;;  %540 = vxpose.xlu1.b32.cont [2/8] (short) (narrow) %v316_v23, 8  ;;  %v329_v24 = vld [vmem:[%s1711_s12 + $0x30] sm:$0xff] }
  0x2b   : > { %435 = vxpose.xlu0.b32.cont [3/8] (short) (narrow) %v309_v4, 8 }
  0x2c   : > { %v356_v28 = vrot.slane %v355_v26, 4 }
  0x2e   : > { %v357_v30 = vmax.f32 %v355_v26, %v356_v28  ;;  %541 = vxpose.xlu1.b32.cont [3/8] (short) (narrow) %v317_v27, 8  ;;  %v330_v26 = vld [vmem:[%s1711_s12 + $0x38] sm:$0xff] }
  0x2f   : > { %436 = vxpose.xlu0.b32.cont [4/8] (short) (narrow) %v310_v8, 8 }
  0x30   : > { %v358_v32 = vrot.slane %v357_v30, 2 }
  0x32   : > { %v359_v34 = vmax.f32 %v357_v30, %v358_v32  ;;  %542 = vxpose.xlu1.b32.cont [4/8] (short) (narrow) %v318_v31, 8 }
  0x33   : > { %437 = vxpose.xlu0.b32.cont [5/8] (short) (narrow) %v1635_v9, 8 }
  0x34   : > { %v360_v36 = vrot.slane %v359_v34, 1 }
  0x36   : > { %v1671_v41 = vmax.f32 %v359_v34, %v360_v36  ;;  %543 = vxpose.xlu1.b32.cont [5/8] (short) (narrow) %v319_v35, 8 }
  0x37   : > { %438 = vxpose.xlu0.b32.cont [6/8] (short) (narrow) %v1640_v12, 8 }
  0x38   : > { %vm364_vm2 = vcmp.eq.f32.partialorder %v309_v4, %v1671_v41  ;;  %vm365_vm3 = vcmp.eq.f32.partialorder %v310_v8, %v1671_v41  ;;  %vm368_vm4 = vcmp.eq.f32.partialorder %v313_v13, %v1671_v41  ;;  %vm369_vm5 = vcmp.eq.f32.partialorder %v1642_v14, %v1671_v41  ;;  %v322_v4 = vld [vmem:[%s1627_s8 + $0x38] sm:$0xff] }
  0x39   : > { %v372_v46 = vsel %vm364_vm2, %v1660_v37, 64  ;;  %v373_v47 = vsel %vm365_vm3, %v1663_v38, 64  ;;  %v376_v48 = vsel %vm368_vm4, %v1666_v39, 64  ;;  %v377_v49 = vsel %vm369_vm5, %v1669_v40, 64 }
  0x3a   : > { %v380_v50 = vsel %vm340_vm1, %v372_v46, 2147483647  ;;  %v381_v51 = vsel %vm340_vm1, %v373_v47, 2147483647  ;;  %v388_v52 = vsel %vm340_vm1, %v376_v48, 2147483647  ;;  %vm362_vm6 = vcmp.eq.f32.partialorder %v1619_v2, %v1671_v41 }
  0x3b   : > { %439 = vxpose.xlu0.b32.cont [7/8] (short) (narrow) %v313_v13, 8  ;;  %vm389_vm7 = vcmp.lt.s32.totalorder %v380_v50, %v388_v52  ;;  %v391_v53 = vsel %vm340_vm1, %v377_v49, 2147483647  ;;  %544 = vxpose.xlu1.b32.cont [6/8] (short) (narrow) %v320_v45, 8  ;;  %vm363_vm8 = vcmp.eq.f32.partialorder %v1621_v3, %v1671_v41  ;;  %vm366_vm9 = vcmp.eq.f32.partialorder %v1635_v9, %v1671_v41  ;;  %v323_v3 = vld [vmem:[%s1711_s12] sm:$0xff]  ;;  %v324_v9 = vld [vmem:[%s1711_s12 + $0x8] sm:$0xff] }
  0x3c   : > { %v390_v54 = vsel %vm389_vm7, %v380_v50, %v388_v52  ;;  %vm392_vm10 = vcmp.lt.s32.totalorder %v381_v51, %v391_v53  ;;  %vm367_vm11 = vcmp.eq.f32.partialorder %v1640_v12, %v1671_v41  ;;  %v370_v56 = vsel %vm362_vm6, %v1655_v33, 64  ;;  %v325_v12 = vld [vmem:[%s1711_s12 + $0x10] sm:$0xff] }
  0x3d   : > { %v393_v57 = vsel %vm392_vm10, %v381_v51, %v391_v53  ;;  %v371_v58 = vsel %vm363_vm8, %v1675_v42, 64  ;;  %v374_v59 = vsel %vm366_vm9, %v1678_v43, 64  ;;  %v375_v60 = vsel %vm367_vm11, %v1681_v44, 64 }
  0x3e   : > { %vm396_vm12 = vcmp.lt.s32.totalorder %v390_v54, %v393_v57  ;;  %v378_v61 = vsel %vm340_vm1, %v370_v56, 2147483647  ;;  %v379_v62 = vsel %vm340_vm1, %v371_v58, 2147483647  ;;  %v382_v63 = vsel %vm340_vm1, %v374_v59, 2147483647 }
  0x3f   : > { %440 = vxpose.xlu0.b32.end [8/8] (short) (narrow) %v1642_v14, 8  ;;  %545 = vxpose.xlu1.b32.cont [7/8] (short) (narrow) %v321_v55, 8  ;;  %vm383_vm13 = vcmp.lt.s32.totalorder %v378_v61, %v382_v63  ;;  %v385_v2 = vsel %vm340_vm1, %v375_v60, 2147483647  ;;  %v397_v6 = vsel %vm396_vm12, %v390_v54, %v393_v57 }
  0x40   : > { %v384_v5 = vsel %vm383_vm13, %v378_v61, %v382_v63  ;;  %vm386_vm14 = vcmp.lt.s32.totalorder %v379_v62, %v385_v2 }
  0x41   : > { %v387_v7 = vsel %vm386_vm14, %v379_v62, %v385_v2 }
  0x42   : > { %vm394_vm15 = vcmp.lt.s32.totalorder %v384_v5, %v387_v7 }
  0x43   : > { %644 = vxpose.xlu0.b32.start [1/8] (short) (narrow) %v323_v3, 8  ;;  %546 = vxpose.xlu1.b32.end [8/8] (short) (narrow) %v322_v4, 8  ;;  %v395_v8 = vsel %vm394_vm15, %v384_v5, %v387_v7 }
  0x44   : > { %vm398_vm2 = vcmp.lt.s32.totalorder %v395_v8, %v397_v6 }
  0x45   : > { %v399_v10 = vsel %vm398_vm2, %v395_v8, %v397_v6 }
  0x46   : > { %v400_v11 = vrot.slane %v399_v10, 4 }
  0x47   : > { %645 = vxpose.xlu0.b32.cont [2/8] (short) (narrow) %v324_v9, 8 }
  0x48   : > { %vm401_vm3 = vcmp.lt.s32.totalorder %v399_v10, %v400_v11 }
  0x49   : > { %v402_v13 = vsel %vm401_vm3, %v399_v10, %v400_v11 }
  0x4a   : > { %v403_v14 = vrot.slane %v402_v13, 2 }
  0x4b   : > { %646 = vxpose.xlu0.b32.cont [3/8] (short) (narrow) %v325_v12, 8 }
  0x4c   : > { %vm404_vm4 = vcmp.lt.s32.totalorder %v402_v13, %v403_v14 }
  0x4d   : > { %v405_v16 = vsel %vm404_vm4, %v402_v13, %v403_v14  ;;  %vm465_vm4 = vcmask 523264  }
  0x4e   : > { %v406_v17 = vrot.slane %v405_v16, 1 }
  0x4f   : > { %647 = vxpose.xlu0.b32.cont [4/8] (short) (narrow) %v326_v15, 8 }
  0x50   : > { %vm407_vm5 = vcmp.lt.s32.totalorder %v405_v16, %v406_v17 }
  0x51   : > { %v408_v19 = vsel %vm407_vm5, %v405_v16, %v406_v17  ;;  %vm756_vm5 = vcmask (!%p1139_p0), 60416  }
  0x52   : > { %vm409_vm6 = vcmp.eq.s32.totalorder %v1655_v33, %v408_v19  ;;  %vm410_vm7 = vcmp.eq.s32.totalorder %v1675_v42, %v408_v19  ;;  %vm411_vm8 = vcmp.eq.s32.totalorder %v1660_v37, %v408_v19  ;;  %vm412_vm9 = vcmp.eq.s32.totalorder %v1663_v38, %v408_v19 }
  0x53   : > { %648 = vxpose.xlu0.b32.cont [5/8] (short) (narrow) %v327_v18, 8  ;;  %vm1731_vm10 = vmpackc.low %vm410_vm7, %vm409_vm6  ;;  %vm413_vm12 = vcmp.eq.s32.totalorder %v1678_v43, %v408_v19  ;;  %vm414_vm13 = vcmp.eq.s32.totalorder %v1681_v44, %v408_v19  ;;  %vm415_vm15 = vcmp.eq.s32.totalorder %v1666_v39, %v408_v19  ;;  %vm416_vm2 = vcmp.eq.s32.totalorder %v1669_v40, %v408_v19 }
  0x54   : > { %1246 = vmatpush3.bf16.msk.msra.mxu0 %vm1731_vm10, %v1500_v22  ;;  %1258 = vmatpush3.bf16.msk.msra.mxu1 %vm1731_vm10, %v1500_v22  ;;  %vm1741_vm11 = vmpackc.low %vm412_vm9, %vm411_vm8 }
  0x55   : > { %1247 = vmatprep.subr.bf16.mxu0 %v1497_v0  ;;  %1259 = vmatprep.subr.bf16.mxu1 %v1497_v0  ;;  %vm1754_vm14 = vmpackc.low %vm414_vm13, %vm413_vm12 }
  0x56   : > { %vm1767_vm3 = vmpackc.low %vm416_vm2, %vm415_vm15 }
  0x57   : > { %649 = vxpose.xlu0.b32.cont [6/8] (short) (narrow) %v328_v21, 8 }
  0x58   : > { %1249 = vmatpush3.bf16.msk.msra.mxu0 %vm1741_vm11, %v1500_v22  ;;  %1261 = vmatpush3.bf16.msk.msra.mxu1 %vm1741_vm11, %v1500_v22 }
  0x59   : > { %1250 = vmatprep.subr.bf16.mxu0 %v1497_v0  ;;  %1262 = vmatprep.subr.bf16.mxu1 %v1497_v0 }
  0x5b   : > { %650 = vxpose.xlu0.b32.cont [7/8] (short) (narrow) %v329_v24, 8 }
  0x5c   : > { %1252 = vmatpush3.bf16.msk.msra.mxu0 %vm1754_vm14, %v1500_v22  ;;  %1264 = vmatpush3.bf16.msk.msra.mxu1 %vm1754_vm14, %v1500_v22 }
  0x5d   : > { %1253 = vmatprep.subr.bf16.mxu0 %v1497_v0  ;;  %1265 = vmatprep.subr.bf16.mxu1 %v1497_v0 }
  0x5f   : > { %651 = vxpose.xlu0.b32.end [8/8] (short) (narrow) %v330_v26, 8 }
  0x60   : > { %1255 = vmatpush3.bf16.msk.msra.mxu0 %vm1767_vm3, %v1500_v22  ;;  %1267 = vmatpush3.bf16.msk.msra.mxu1 %vm1767_vm3, %v1500_v22 }
  0x61   : > { %1268 = vmatprep.subr.bf16.mxu0 %v1497_v0 }
  0xa3   : > { %v449_v28 = vpop.trf.xlu0 }
  0xa4   : > { %1199 = vmatmul.mubr.msk.f32.vlgmr.msra.gmra.mrb[0].mxu0 %vm465_vm4, %v449_v28 }
  0xa5   : > { %1270 = vmatpush3.bf16.msk.msra.mxu0 %vm1731_vm10, %v1500_v22  ;;  %1236 = vmatprep.mubr.msk.f32.mxu0 %vm1498_vm0, %v1499_v1  ;;  %vm753_vm0 = vcmask (!%p1139_p0), 57344  }
  0xa6   : > { %1271 = vmatprep.subr.bf16.mxu0 %v1497_v0  ;;  %754 = vst.msk [vmem:[#allocation2] sm:$0x1] (!%p1139_p0), %vm753_vm0, %v1671_v41 }
  0xa7   : > { %v555_v30 = vpop.trf.xlu1 }
  0xa8   : > { %1218 = vmatmul.mubr.msk.f32.vlgmr.msra.gmra.mrb[0].mxu1 %vm465_vm4, %v555_v30 }
  0xa9   : > { %1273 = vmatpush3.bf16.msk.msra.mxu0 %vm1741_vm11, %v1500_v22 }
  0xaa   : > { %1274 = vmatprep.subr.bf16.mxu0 %v1497_v0 }
  0xad   : > { %1276 = vmatpush3.bf16.msk.msra.mxu0 %vm1754_vm14, %v1500_v22 }
  0xae   : > { %1277 = vmatprep.subr.bf16.mxu0 %v1497_v0 }
  0xb1   : > { %1279 = vmatpush3.bf16.msk.msra.mxu0 %vm1767_vm3, %v1500_v22 }
  0xc3   : > { %v660_v1 = vpop.trf.xlu0 }
  0xc4   : > { %1237 = vmatmul.mubr.msk.f32.vlgmr.msra.gmra.mrb[2].mxu0 %vm465_vm4, %v660_v1 }
 0x177   : > { %v535_v31 = vpop.f32.mrb[0].mxu0 }
 0x178   : > { %v1200_v32 = vpop.f32.mrb[1].mxu0  ;;  %755 = vst.msk [vmem:[#allocation3] sm:$0xff] (!%p1139_p0), %vm340_vm1, %v535_v31 }
 0x17b   : > { %v640_v34 = vpop.f32.mrb[0].mxu1 }
 0x17c   : > { %v1219_v35 = vpop.f32.mrb[1].mxu1  ;;  %757 = vst.msk [vmem:[#allocation3 + $0x8] sm:$0xf] (!%p1139_p0), %vm756_vm5, %v640_v34 }
 0x192   : > { %752 = sbr.rel (%p1139_p0) target bundleno = 409 (0x199), region = 36 }
 0x197   : > { %v745_v36 = vpop.f32.mrb[2].mxu0 }
 0x198   : > { %v1238_v37 = vpop.f32.mrb[3].mxu0  ;;  %758 = vst.msk [vmem:[#allocation3 + $0xc] sm:$0xf] (!%p1139_p0), %vm756_vm5, %v745_v36 }
 0x199 PF: > { %p1140_p1 = scmp.le.s32.totalorder %s1479_s18, 0 }
 0x19a   : > { %v763_v0 = vld [vmem:[#allocation2] sm:$0x1] (!%p1140_p1)  ;;  %vm766_vm6 = vcmask (!%p1140_p1), 57344   ;;  %v772_v38 = vsub.s32 (!%p1140_p1), 0, %v1655_v33  ;;  %v1501_v40 = vmov (!%p1140_p1), 0   ;;  %v768_v43 = vld [vmem:[#allocation3] sm:$0xff] (!%p1140_p1) }
 0x19b   : > { %762 = sbr.rel (%p1140_p1) target bundleno = 419 (0x1a3), region = 40  ;;  %vm764_vm7 = vcmp.gt.f32.partialorder (!%p1140_p1), %v1671_v41, %v763_v0  ;;  %v777_v45 = vld [vmem:[#allocation3 + $0x8] sm:$0xf] (!%p1140_p1)  ;;  %vm779_vm8 = vcmask (!%p1140_p1), 60416  }
 0x19c   : > { %v765_v39 = vsel (!%p1140_p1), %vm764_vm7, %v1671_v41, %v763_v0  ;;  %v769_v42 = vsel (!%p1140_p1), %vm764_vm7, 1, %v1501_v40 }
 0x19d   : > { %767 = vst.msk [vmem:[#allocation2] sm:$0x1] (!%p1140_p1), %vm766_vm6, %v765_v39  ;;  %v773_v44 = vrot.slane (!%p1140_p1), %v769_v42, %v772_v38 }
 0x19f   : > { %v781_v46 = vld [vmem:[#allocation3 + $0xc] sm:$0xf] (!%p1140_p1)  ;;  %vm774_vm9 = vcmp.eq.s32.totalorder (!%p1140_p1), %v773_v44, 1 }
 0x1a0   : > { %v775_v47 = vsel (!%p1140_p1), %vm774_vm9, %v535_v31, %v768_v43  ;;  %v778_v48 = vsel (!%p1140_p1), %vm774_vm9, %v640_v34, %v777_v45  ;;  %v782_v49 = vsel (!%p1140_p1), %vm774_vm9, %v745_v36, %v781_v46 }
 0x1a1   : > { %776 = vst.msk [vmem:[#allocation3] sm:$0xff] (!%p1140_p1), %vm340_vm1, %v775_v47 }
 0x1a2   : > { %780 = vst.msk [vmem:[#allocation3 + $0x8] sm:$0xf] %vm779_vm8, %v778_v48  ;;  %783 = vst.msk [vmem:[#allocation3 + $0xc] sm:$0xf] %vm779_vm8, %v782_v49 }
 0x1a3 PF: > { %p1141_p2 = scmp.ne.s32.totalorder %s1479_s18, 2 }
 0x1a4   : > { %v789_v41 = vand.u32 (!%p1141_p2), 127, %v331_v29  ;;  %v1502_v52 = vmov (!%p1141_p2), 1.0  }
 0x1a5   : > { %787 = sbr.rel (%p1141_p2) target bundleno = 669 (0x29d), region = 44 }
 0x1a6   : > { %vm790_vm10 = vcmp.eq.s32.totalorder (!%p1141_p2), %v1655_v33, %v789_v41 }
 0x1a7   : > { %1239 = vmatprep.subr.msk.mxu0 (!%p1141_p2), %vm790_vm10, %v1502_v52 }
 0x1a8   : > { %1240 = vmatpush3.msk.msra.mxu0 (!%p1141_p2), %vm790_vm10, %v1502_v52 }
 0x1a9   : > { %v793_v50 = vld [vmem:[#allocation3] sm:$0xff] (!%p1141_p2)  ;;  %v794_v51 = vld [vmem:[#allocation3 + $0x8] sm:$0xff] (!%p1141_p2) }
 0x1aa   : > { %1241 = vmatprep.mubr.msk.f32.mxu0 (!%p1141_p2), %vm340_vm1, %v793_v50 }
 0x1ab   : > { %1242 = vmatmul.mubr.msk.f32.vlgmr.msra.gmra.mrb[0].mxu0 (!%p1141_p2), %vm340_vm1, %v794_v51 }
 0x27e   : > { %v1243_v53 = vpop.f32.mrb[0].mxu0 }
 0x27f   : > { %v877_v54 = vmul.f32 0.2, %v1243_v53  ;;  %v879_v55 = vrot.slane %v1243_v53, 6  ;;  %v867_v56 = vpop.f32.mrb[1].mxu0  ;;  %v876_v63 = vmul.f32 0.1, %v1243_v53 }
 0x280   : > { %912 = vst [vmem:[%s1792_s13] sm:$0xff] %v867_v56 }
 0x281   : > { %v881_v57 = vsub.f32 %v1243_v53, %v879_v55  ;;  %v887_v58 = vmul.f32 1.442695, %v877_v54 }
 0x283   : > { %v882_v59 = vmul.f32 0.5, %v881_v57  ;;  %1367 = vpow2.f32 %v887_v58  ;;  %v890_v61 = vrot.slane %v881_v57, 4  ;;  %v893_v62 = vrot.slane %v881_v57, 6 }
 0x285   : > { %v884_v29 = vrot.slane %v882_v59, 2  ;;  %v895_v4 = vmul.f32 %v893_v62, %v876_v63 }
 0x287   : > { %v886_v60 = vadd.f32 %v1243_v53, %v884_v29 }
 0x289   : > { %v897_v3 = vrot.slane %v886_v60, 4 }
 0x28b   : > { %v899_v6 = vadd.f32 %v897_v3, %v895_v4 }
 0x28d   : > { %v1368_v33 = vpop.eup %1367 }
 0x28e   : > { %v892_v2 = vmul.f32 %v1368_v33, %v890_v61 }
 0x290   : > { %v900_v5 = vmul.f32 0.5, %v892_v2 }
 0x292   : > { %v902_v7 = vrot.slane %v900_v5, 2 }
 0x294   : > { %v904_v8 = vsub.f32 %v899_v6, %v902_v7  ;;  %v905_v9 = vadd.f32 %v902_v7, %v899_v6 }
 0x296   : > { %v1281_v10 = vtrunc.f32 %v904_v8  ;;  %v1283_v11 = vtrunc.f32 %v905_v9 }
 0x298   : > { %v1282_v12 = vcvt.f32.s32 %v1281_v10  ;;  %v1284_v13 = vcvt.f32.s32 %v1283_v11 }
 0x29a   : > { %vm907_vm1 = vcmp.gt.s32.totalorder %v1282_v12, 0  ;;  %vm910_vm11 = vcmp.lt.s32.totalorder %v1284_v13, 31 }
 0x29b   : > { %v908_v14 = vsel %vm907_vm1, %v1282_v12, 0  ;;  %v911_v15 = vsel %vm910_vm11, %v1284_v13, 31 }
 0x29c   : > { %913 = vst [vmem:[%s1796_s14] sm:$0x3] %v908_v14  ;;  %914 = vst [vmem:[%s1796_s14 + $0x2] sm:$0x3] %v911_v15 }
 0x29d PF: > { %s1148_s18 = sshll.u32 %s1483_s19, 7  ;;  %s934_s24 = sshll.u32 %s1792_s13, 4  ;;  %s935_s24 = int_to_ptr.vmem [resolvable:$true] %s934_s24 }
 0x29e   : > { %s1818_s23 = scalar_lea.hbm %s1895_s3, %s1148_s18  ;;  %s916_s29 = scalar_lea.sflag [#allocation5], %s1602_s7 }
 0x29f   : > { %s1369_s30 = scalar_lea.vmem %s935_s24, 128  ;;  %s1503_s8 = smov [#allocation4]  }
 0x2a0   : > { %p1370_p4 = scmp.ne.s32.totalorder %s935_s24, %s1369_s30  ;;  %s1373_s6 = sshll.u32 %s1503_s8, 4  ;;  %s1374_s6 = int_to_ptr.vmem [resolvable:$false] %s1373_s6 }
 0x2a1   : > { %s1375_s9 = scalar_lea.vmem %s1374_s6, 256  ;;  %p1376_p7 = scmp.lt.s32.totalorder %s935_s24, %s1374_s6 }
 0x2a2   : > { %p1371_p5 = pnand %p1370_p4, %p1579_p3  ;;  %p1377_p8 = scmp.lt.s32.totalorder %s1375_s9, %s1369_s30 }
 0x2a4   : > { %p1372_p6 = pneg %p1371_p5  ;;  %p1378_p10 = por %p1377_p8, %p1376_p7 }
 0x2a6   : > { %p1379_p11 = pnand %p1378_p10, %p1372_p6 }
 0x2a8   : > { %1382 = shalt.err (!%p1379_p11)
}
 0x2a9   : > { %s1383_s12 = scalar_lea.hbm %s1818_s23, 128  ;;  %s1387_s10 = scalar_lea.hbm %s1895_s3, 256 }
 0x2aa   : > { %p1384_p12 = scmp.ne.s32.totalorder %s1818_s23, %s1383_s12  ;;  %p1388_p1 = scmp.lt.u32.totalorder %s1818_s23, %s1895_s3 }
 0x2ab   : > { %p1389_p2 = scmp.lt.u32.totalorder %s1387_s10, %s1383_s12  ;;  %p1391_p5 = scmp.lt.u32.totalorder %s1383_s12, %s1818_s23 }
 0x2ac   : > { %p1385_p13 = pnand %p1384_p12, %p1579_p3 }
 0x2ad   : > { %p1390_p4 = por %p1389_p2, %p1388_p1 }
 0x2ae   : > { %p1386_p0 = pneg %p1385_p13 }
 0x2af   : > { %p1392_p6 = por %p1391_p5, %p1390_p4 }
 0x2b1   : > { %p1393_p7 = pnand %p1392_p6, %p1386_p0 }
 0x2b3   : > { %1396 = shalt.err (!%p1393_p7)
}
 0x2b4   : > { %1285 = dma.vmem_to_hbm [thread:$0]  (%p1579_p3), %s935_s24, 128, %s1818_s23, %s916_s29  }
 0x2b5   : > { %s1149_s30 = sshll.u32 %s1483_s19, 6  ;;  %s947_s6 = sshll.u32 %s1796_s14, 4  ;;  %s948_s6 = int_to_ptr.vmem [resolvable:$true] %s947_s6 }
 0x2b6   : > { %s1844_s18 = scalar_lea.hbm %s1896_s4, %s1149_s30  ;;  %s921_s12 = scalar_lea.sflag [#allocation7], %s1602_s7 }
 0x2b7   : > { %s1397_s10 = scalar_lea.vmem %s948_s6, 64  ;;  %s1504_s11 = smov [#allocation6]  }
 0x2b8   : > { %p1398_p8 = scmp.ne.s32.totalorder %s948_s6, %s1397_s10  ;;  %s1401_s8 = sshll.u32 %s1504_s11, 4  ;;  %s1402_s8 = int_to_ptr.vmem [resolvable:$false] %s1401_s8 }
 0x2b9   : > { %s1403_s0 = scalar_lea.vmem %s1402_s8, 128  ;;  %p1404_p12 = scmp.lt.s32.totalorder %s948_s6, %s1402_s8 }
 0x2ba   : > { %p1399_p10 = pnand %p1398_p8, %p1579_p3  ;;  %p1405_p13 = scmp.lt.s32.totalorder %s1403_s0, %s1397_s10 }
 0x2bc   : > { %p1400_p11 = pneg %p1399_p10  ;;  %p1406_p0 = por %p1405_p13, %p1404_p12 }
 0x2be   : > { %p1407_p1 = pnand %p1406_p0, %p1400_p11 }
 0x2c0   : > { %1410 = shalt.err (!%p1407_p1)
}
 0x2c1   : > { %s1411_s19 = scalar_lea.hbm %s1844_s18, 64  ;;  %s1415_s23 = scalar_lea.hbm %s1896_s4, 128 }
 0x2c2   : > { %p1412_p2 = scmp.ne.s32.totalorder %s1844_s18, %s1411_s19  ;;  %p1416_p6 = scmp.lt.u32.totalorder %s1844_s18, %s1896_s4 }
 0x2c3   : > { %p1417_p7 = scmp.lt.u32.totalorder %s1415_s23, %s1411_s19  ;;  %p1419_p10 = scmp.lt.u32.totalorder %s1411_s19, %s1844_s18 }
 0x2c4   : > { %p1413_p4 = pnand %p1412_p2, %p1579_p3 }
 0x2c5   : > { %p1418_p8 = por %p1417_p7, %p1416_p6 }
 0x2c6   : > { %p1414_p5 = pneg %p1413_p4 }
 0x2c7   : > { %p1420_p11 = por %p1419_p10, %p1418_p8 }
 0x2c9   : > { %p1421_p12 = pnand %p1420_p11, %p1414_p5 }
 0x2cb   : > { %1424 = shalt.err (!%p1421_p12)
}
 0x2cc   : > { %1286 = dma.vmem_to_hbm [thread:$0]  (%p1579_p3), %s948_s6, 64, %s1844_s18, %s921_s12  }
 0x2cd PF: > { %p1296_p13 = scmp.ge.s32.totalorder %s1495_s22, 2  ;;  %s959_s0 = sand.u32 1, %s1467_s15  }
 0x2ce   : > { %s960_s30 = scalar_lea.sflag [#allocation5], %s959_s0 }
 0x2cf   : > { %p1290_p0 = pnand %p1296_p13, %p1589_p9 }
 0x2d1   : > { %1458 = dma.done.wait (!%p1290_p0), %s960_s30, 128  }
 0x2d2   : > { %1460 = vsyncadd (!%p1290_p0), %s960_s30, 4294967168  ;;  %s969_s9 = scalar_lea.sflag [#allocation7], %s959_s0 }
 0x2d3   : > { %1462 = dma.done.wait (!%p1290_p0), %s969_s9, 64  }
 0x2d4   : > { %1464 = vsyncadd (!%p1290_p0), %s969_s9, 4294967232  ;;  %s21_s22 = sadd.s32 1, %s1495_s22   ;;  %s1909_s15 = smov %s1471_s16 }
 0x2d5   : > { %p18_p1 = scmp.ge.s32.totalorder %s21_s22, 8   ;;  %s1910_s16 = smov %s1475_s17 }
 0x2d6   : > { %s1911_s17 = smov %s1597_s5  ;;  %s1912_s18 = smov %s1487_s20 }
 0x2d7   : > { %s1913_s19 = smov %s1491_s21  ;;  %s1914_s20 = smov %s1917_s25 }
 0x2d8   : > { %s1915_s21 = smov %s1921_s26  ;;  %20 = sbr.rel (!%p18_p1) target bundleno = 9 (0x9), region = 102 }
 0x2df   :  { %974 = vsyncpa [#allocation5], 1 }
 0x2e0   :  { %976 = vsyncpa [#allocation5 + $0x1], 1 }
 0x2e1   :  { %977 = vsyncpa [#allocation7], 1 }
 0x2e2   :  { %979 = vsyncpa [#allocation7 + $0x1], 1 }

</bundles_post_ra>
